<compile_context>
chip_gen: v6e
topology: v6e:2x2x1
jax: 0.10.0
libtpu: 0.0.40
codegen_flags: <defaults>
</compile_context>

<pallas_src>
import jax
import jax.numpy as jnp
from jax.experimental import pallas as pl
from jax.experimental.pallas import tpu as pltpu

HIDDEN1 = 512
HIDDEN2 = 128


def _fusion_kernel(x_ref, w1_ref, b1_ref, w2_ref, b2_ref, o_ref):
    # x_ref:  (tm, C)   f32 tile of rows (B*T rows total)
    # w1_ref: (C, 512)  bf16    b1_ref: (1, 512) f32
    # w2_ref: (512,128) bf16    b2_ref: (1, 128) f32
    # o_ref:  (tm, 128) f32
    x = x_ref[...].astype(jnp.bfloat16)              # in-kernel cast (hides under MXU)
    h = jnp.dot(x, w1_ref[...],
                preferred_element_type=jnp.float32) + b1_ref[...]
    h = jnp.maximum(h, 0.0)                          # f32 bias+ReLU (eval dropout = id)
    y = jnp.dot(h.astype(jnp.bfloat16), w2_ref[...],
                preferred_element_type=jnp.float32) + b2_ref[...]
    o_ref[...] = jnp.maximum(y, 0.0).astype(o_ref.dtype)


def _working_set_bytes(tile_m: int, C: int) -> int:
    # Double-buffered f32 x tiles + double-buffered bf16 weights + f32 biases
    # + f32 hidden (and its bf16 re-cast copy) + double-buffered f32 out tiles.
    x_db = 2 * tile_m * C * 4
    w_db = 2 * (C * HIDDEN1 + HIDDEN1 * HIDDEN2) * 2
    b_db = 2 * (HIDDEN1 + HIDDEN2) * 4
    hidden = tile_m * HIDDEN1 * (4 + 2)
    out_db = 2 * tile_m * HIDDEN2 * 4
    return x_db + w_db + b_db + hidden + out_db


# Keep the per-tile working set comfortably inside every generation's budget
# (v5e 16 MiB scoped default, v6e 32 MiB scoped, v7x 64 MiB physical / 32 scoped).
_TILE_WORKING_SET_CAP = 16 << 20


def _cdiv(a: int, b: int) -> int:
    return -(-a // b)


def _round8(n: int) -> int:
    return max(8, ((n + 7) // 8) * 8)


def _pick_tile_m(M: int, C: int, max_tile: int = 2048) -> int:
    tm = min(max_tile, _round8(M))
    # Shrink (8-aligned) until the working set fits the VMEM cap.
    while tm > 8 and _working_set_bytes(tm, C) > _TILE_WORKING_SET_CAP:
        tm = _round8(tm // 2)
    # v7x megacore balance: avoid an odd tile count > 1 (one TC idles on the tail).
    n = _cdiv(M, tm)
    if n > 1 and n % 2 == 1:
        tm = _round8(_cdiv(M, n + 1))
    return tm


def fusion_block_forward(x, w1, b1, w2, b2, *, max_tile_m=2048):
    """x: (B, T, C) float32 -> (B, T, 128) float32 (eval-mode forward)."""
    B, T, C = x.shape
    M = B * T
    tile_m = _pick_tile_m(M, C, max_tile_m)
    n_tiles = _cdiv(M, tile_m)

    # Flatten rows only (no cast, no pad: both were extra HBM passes).
    x2d = x.reshape(M, C)
    w1_b = w1.astype(jnp.bfloat16)
    w2_b = w2.astype(jnp.bfloat16)
    b1_2d = b1.reshape(1, HIDDEN1).astype(jnp.float32)
    b2_2d = b2.reshape(1, HIDDEN2).astype(jnp.float32)

    ws = _working_set_bytes(tile_m, C)
    vmem_limit = max(16 << 20, min(int(1.5 * ws) + (2 << 20), 30 << 20))

    out2d = pl.pallas_call(
        _fusion_kernel,
        out_shape=jax.ShapeDtypeStruct((M, HIDDEN2), jnp.float32),
        grid_spec=pl.GridSpec(
            grid=(n_tiles,),
            in_specs=[
                pl.BlockSpec((tile_m, C), lambda i: (i, 0)),            # x rows (f32)
                pl.BlockSpec((C, HIDDEN1), lambda i: (0, 0)),           # W1 (grid-invariant)
                pl.BlockSpec((1, HIDDEN1), lambda i: (0, 0)),           # b1 (grid-invariant)
                pl.BlockSpec((HIDDEN1, HIDDEN2), lambda i: (0, 0)),     # W2 (grid-invariant)
                pl.BlockSpec((1, HIDDEN2), lambda i: (0, 0)),           # b2 (grid-invariant)
            ],
            out_specs=pl.BlockSpec((tile_m, HIDDEN2), lambda i: (i, 0)),  # lane-dense (128)
        ),
        compiler_params=pltpu.CompilerParams(
            dimension_semantics=("parallel",),   # shards rows across v7x's 2 TCs
            vmem_limit_bytes=vmem_limit),
    )(x2d, w1_b, b1_2d, w2_b, b2_2d)

    return out2d.reshape(B, T, HIDDEN2)


def _reference_forward(x, w1, b1, w2, b2):
    # Pure-JAX reference mirroring the PyTorch forward (eval mode) with the
    # same bf16-operand / f32-accumulate numerics as the kernel.
    # NOTE: bf16 operands diverge from the f32 PyTorch module by ~1e-2 rel;
    # acceptable for this network but documented here.
    xb = x.astype(jnp.bfloat16)
    w1b = w1.astype(jnp.bfloat16)
    w2b = w2.astype(jnp.bfloat16)
    h = jnp.einsum("btc,ch->bth", xb, w1b,
                   preferred_element_type=jnp.float32) + b1
    h = jnp.maximum(h, 0.0)
    y = jnp.einsum("bth,ho->bto", h.astype(jnp.bfloat16), w2b,
                   preferred_element_type=jnp.float32) + b2
    return jnp.maximum(y, 0.0)


if __name__ == "__main__":
    key = jax.random.PRNGKey(0)
    B, T, C = 2, 8, 32  # small shapes: batch=2, seq=8, feature_dim=32

    k_x, k_w1, k_b1, k_w2, k_b2 = jax.random.split(key, 5)

    x = jax.random.normal(k_x, (B, T, C), dtype=jnp.float32)

    # Parameters from nn.Conv1d(k=1), stored transposed so the kernel does x @ W.
    w1 = jax.random.normal(k_w1, (C, HIDDEN1), dtype=jnp.float32) * (1.0 / jnp.sqrt(C))
    b1 = jax.random.normal(k_b1, (HIDDEN1,), dtype=jnp.float32) * 0.01
    w2 = jax.random.normal(k_w2, (HIDDEN1, HIDDEN2), dtype=jnp.float32) * (1.0 / jnp.sqrt(HIDDEN1))
    b2 = jax.random.normal(k_b2, (HIDDEN2,), dtype=jnp.float32) * 0.01

    out = fusion_block_forward(x, w1, b1, w2, b2)
    out = jax.block_until_ready(out)

    ref = _reference_forward(x, w1, b1, w2, b2)
    assert out.shape == (B, T, HIDDEN2), out.shape
    assert jnp.allclose(out, ref, atol=2e-2, rtol=2e-2), "mismatch vs reference"

    print("KERNEL_OK")
</pallas_src>

<mosaic_0001>
module attributes {stable_mosaic.version = 11 : i64} {
  func.func @_fusion_kernel(%arg0: i32, %arg1: memref<16x32xf32, #tpu.memory_space<vmem>>, %arg2: memref<32x512xbf16, #tpu.memory_space<vmem>>, %arg3: memref<1x512xf32, #tpu.memory_space<vmem>>, %arg4: memref<512x128xbf16, #tpu.memory_space<vmem>>, %arg5: memref<1x128xf32, #tpu.memory_space<vmem>>, %arg6: memref<16x128xf32, #tpu.memory_space<vmem>>) attributes {dimension_semantics = [#tpu.dimension_semantics<parallel>], iteration_bounds = array<i64: 1>, scalar_prefetch = 0 : i64, scratch_operands = 0 : i64, tpu.core_type = #tpu.core_type<tc>, window_params = [{transform_indices = @transform_0, window_bounds = array<i64: 16, 32>}, {pipeline_mode = #tpu.pipeline_mode<synchronous>, transform_indices = @transform_1, window_bounds = array<i64: 32, 512>}, {pipeline_mode = #tpu.pipeline_mode<synchronous>, transform_indices = @transform_2, window_bounds = array<i64: 1, 512>}, {pipeline_mode = #tpu.pipeline_mode<synchronous>, transform_indices = @transform_3, window_bounds = array<i64: 512, 128>}, {pipeline_mode = #tpu.pipeline_mode<synchronous>, transform_indices = @transform_4, window_bounds = array<i64: 1, 128>}, {transform_indices = @transform_5, window_bounds = array<i64: 16, 128>}]} {
    %c0 = arith.constant 0 : index
    %c0_0 = arith.constant 0 : index
    %0 = vector.load %arg1[%c0, %c0_0] : memref<16x32xf32, #tpu.memory_space<vmem>>, vector<16x32xf32>
    %1 = arith.truncf %0 : vector<16x32xf32> to vector<16x32xbf16>
    %c0_1 = arith.constant 0 : index
    %c0_2 = arith.constant 0 : index
    %2 = vector.load %arg2[%c0_1, %c0_2] : memref<32x512xbf16, #tpu.memory_space<vmem>>, vector<32x512xbf16>
    %cst = arith.constant dense<0.000000e+00> : vector<16x512xf32>
    %3 = tpu.matmul %1, %2, %cst {dimension_numbers = #tpu.dot_dimension_numbers<[1], [0], [0], [1], [0, 0, 1, 1], [], []>} : vector<16x32xbf16>, vector<32x512xbf16>, vector<16x512xf32> -> vector<16x512xf32>
    %c0_3 = arith.constant 0 : index
    %c0_4 = arith.constant 0 : index
    %4 = vector.load %arg3[%c0_3, %c0_4] : memref<1x512xf32, #tpu.memory_space<vmem>>, vector<1x512xf32>
    %5 = vector.broadcast %4 : vector<1x512xf32> to vector<16x512xf32>
    %6 = arith.addf %3, %5 : vector<16x512xf32>
    %cst_5 = arith.constant 0.000000e+00 : f32
    %7 = vector.broadcast %cst_5 : f32 to vector<16x512xf32>
    %8 = arith.maximumf %6, %7 : vector<16x512xf32>
    %9 = arith.truncf %8 : vector<16x512xf32> to vector<16x512xbf16>
    %c0_6 = arith.constant 0 : index
    %c0_7 = arith.constant 0 : index
    %10 = vector.load %arg4[%c0_6, %c0_7] : memref<512x128xbf16, #tpu.memory_space<vmem>>, vector<512x128xbf16>
    %cst_8 = arith.constant dense<0.000000e+00> : vector<16x128xf32>
    %11 = tpu.matmul %9, %10, %cst_8 {dimension_numbers = #tpu.dot_dimension_numbers<[1], [0], [0], [1], [0, 0, 1, 1], [], []>} : vector<16x512xbf16>, vector<512x128xbf16>, vector<16x128xf32> -> vector<16x128xf32>
    %c0_9 = arith.constant 0 : index
    %c0_10 = arith.constant 0 : index
    %12 = vector.load %arg5[%c0_9, %c0_10] : memref<1x128xf32, #tpu.memory_space<vmem>>, vector<1x128xf32>
    %13 = vector.broadcast %12 : vector<1x128xf32> to vector<16x128xf32>
    %14 = arith.addf %11, %13 : vector<16x128xf32>
    %cst_11 = arith.constant 0.000000e+00 : f32
    %15 = vector.broadcast %cst_11 : f32 to vector<16x128xf32>
    %16 = arith.maximumf %14, %15 : vector<16x128xf32>
    %c0_12 = arith.constant 0 : index
    %c0_13 = arith.constant 0 : index
    %17 = vector.load %arg6[%c0_12, %c0_13] : memref<16x128xf32, #tpu.memory_space<vmem>>, vector<16x128xf32>
    tpu.vector_store %arg6[%c0_12, %c0_13], %16 {strides = array<i32>} : memref<16x128xf32, #tpu.memory_space<vmem>>, vector<16x128xf32>,
    return
  }
  func.func @transform_0(%arg0: i32) -> (i32, i32) {
    %c0_i32 = arith.constant 0 : i32
    %c0_i32_0 = arith.constant 0 : i32
    return %arg0, %c0_i32 : i32, i32
  }
  func.func @transform_1(%arg0: i32) -> (i32, i32) {
    %c0_i32 = arith.constant 0 : i32
    %c0_i32_0 = arith.constant 0 : i32
    %c0_i32_1 = arith.constant 0 : i32
    return %c0_i32, %c0_i32_0 : i32, i32
  }
  func.func @transform_2(%arg0: i32) -> (i32, i32) {
    %c0_i32 = arith.constant 0 : i32
    %c0_i32_0 = arith.constant 0 : i32
    %c0_i32_1 = arith.constant 0 : i32
    return %c0_i32, %c0_i32_0 : i32, i32
  }
  func.func @transform_3(%arg0: i32) -> (i32, i32) {
    %c0_i32 = arith.constant 0 : i32
    %c0_i32_0 = arith.constant 0 : i32
    %c0_i32_1 = arith.constant 0 : i32
    return %c0_i32, %c0_i32_0 : i32, i32
  }
  func.func @transform_4(%arg0: i32) -> (i32, i32) {
    %c0_i32 = arith.constant 0 : i32
    %c0_i32_0 = arith.constant 0 : i32
    %c0_i32_1 = arith.constant 0 : i32
    return %c0_i32, %c0_i32_0 : i32, i32
  }
  func.func @transform_5(%arg0: i32) -> (i32, i32) {
    %c0_i32 = arith.constant 0 : i32
    %c0_i32_0 = arith.constant 0 : i32
    return %arg0, %c0_i32 : i32, i32
  }
}

</mosaic_0001>

<bundles_post_ra>
// kernel: tpu_custom_call.1
= control target key start
LH: loop header
LB: loop body
LE: loop exit
PB: predicated region body
PF: predicated region fallthrough
CT: control target
= control target key end

     0   :  { %10 = vsyncpa [#allocation3], 0  ;;  %s935_s0 = inlined_call_operand.hbm [shape: f32[16,32], index: 0, kind: input, shape index: {}]   ;;  %s936_s1 = inlined_call_operand.hbm [shape: bf16[32,512], index: 1, kind: input, shape index: {}]   ;;  %s937_s2 = inlined_call_operand.hbm [shape: f32[1,512], index: 2, kind: input, shape index: {}]   ;;  %s938_s3 = inlined_call_operand.hbm [shape: bf16[512,128], index: 3, kind: input, shape index: {}]   ;;  %s939_s4 = inlined_call_operand.vmem [shape: f32[1,128], index: 4, kind: input, shape index: {}]   ;;  %s940_s5 = inlined_call_operand.hbm [shape: f32[16,128], index: 5, kind: output, shape index: {}]  }
   0x1   :  { %11 = vsyncpa [#allocation6], 0 }
   0x2   :  { %12 = vsyncpa [#allocation9], 0 }
   0x3   :  { %13 = vsyncpa [#allocation4], 0  ;;  %s869_s18 = smov [#allocation5]  }
   0x4   :  { %s31_s19 = sshll.u32 %s869_s18, 4  ;;  %s32_s19 = int_to_ptr.vmem [resolvable:$true] %s31_s19 }
   0x5   :  { %s769_s20 = scalar_lea.vmem %s32_s19, 1024  ;;  %p774_p1 = scmp.lt.s32.totalorder %s32_s19, %s32_s19 }
   0x6   :  { %p770_p0 = scmp.ne.s32.totalorder %s32_s19, %s769_s20  ;;  %p775_p2 = scmp.lt.s32.totalorder %s769_s20, %s769_s20 }
   0x8   :  { %p776_p3 = por %p775_p2, %p774_p1 }
   0xa   :  { %p777_p4 = pnand %p776_p3, %p770_p0 }
   0xc   :  { %780 = shalt.err (!%p777_p4)
}
   0xd   :  { %s870_s21 = smov 256   ;;  %s871_s22 = smov 16  }
   0xe   :  { %37 = dma.hbm_to_vmem [thread:$0]  %s936_s1, 1024, %s32_s19, [#allocation6], %s870_s21, %s870_s21, %s871_s22  }
   0xf   :  { %s872_s25 = smov [#allocation2]  }
  0x10   :  { %s19_s26 = sshll.u32 %s872_s25, 4  ;;  %s20_s26 = int_to_ptr.vmem [resolvable:$true] %s19_s26 }
  0x11   :  { %s789_s27 = scalar_lea.vmem %s20_s26, 256  ;;  %p794_p6 = scmp.lt.s32.totalorder %s20_s26, %s20_s26 }
  0x12   :  { %p790_p5 = scmp.ne.s32.totalorder %s20_s26, %s789_s27  ;;  %p795_p7 = scmp.lt.s32.totalorder %s789_s27, %s789_s27 }
  0x14   :  { %p796_p8 = por %p795_p7, %p794_p6 }
  0x16   :  { %p797_p9 = pnand %p796_p8, %p790_p5 }
  0x18   :  { %800 = shalt.err (!%p797_p9)
}
  0x19   :  { %s873_s28 = smov 128   ;;  %s874_s29 = smov 8  }
  0x1a   :  { %25 = dma.hbm_to_vmem [thread:$0]  %s935_s0, 256, %s20_s26, [#allocation3], %s873_s28, %s873_s28, %s874_s29  }
  0x1b   :  { %s875_s1 = smov [#allocation7]   ;;  %s876_s8 = smov [#allocation8]  }
  0x1c   :  { %s44_s7 = sshll.u32 %s875_s1, 4  ;;  %s53_s9 = sshll.u32 %s876_s8, 4  ;;  %s45_s7 = int_to_ptr.vmem [resolvable:$true] %s44_s7  ;;  %s54_s9 = int_to_ptr.vmem [resolvable:$true] %s53_s9 }
  0x1d   :  { %s809_s10 = scalar_lea.vmem %s45_s7, 64  ;;  %p814_p11 = scmp.lt.s32.totalorder %s45_s7, %s45_s7 }
  0x1e   :  { %p810_p10 = scmp.ne.s32.totalorder %s45_s7, %s809_s10  ;;  %p815_p12 = scmp.lt.s32.totalorder %s809_s10, %s809_s10 }
  0x20   :  { %p816_p13 = por %p815_p12, %p814_p11 }
  0x22   :  { %p817_p0 = pnand %p816_p13, %p810_p10 }
  0x24   :  { %820 = shalt.err (!%p817_p0)
}
  0x25   :  { %47 = dma.hbm_to_vmem [thread:$0]  %s937_s2, 64, %s45_s7, [#allocation6]  }
  0x26   :  { %s829_s13 = scalar_lea.vmem %s54_s9, 4096  ;;  %p834_p2 = scmp.lt.s32.totalorder %s54_s9, %s54_s9 }
  0x27   :  { %p830_p1 = scmp.ne.s32.totalorder %s54_s9, %s829_s13  ;;  %p835_p3 = scmp.lt.s32.totalorder %s829_s13, %s829_s13 }
  0x29   :  { %p836_p4 = por %p835_p3, %p834_p2 }
  0x2b   :  { %p837_p5 = pnand %p836_p4, %p830_p1 }
  0x2d   :  { %840 = shalt.err (!%p837_p5)
}
  0x2e   :  { %s877_s0 = smov 64   ;;  %s878_s14 = smov 4  }
  0x2f   :  { %59 = dma.hbm_to_vmem [thread:$0]  %s938_s3, 4096, %s54_s9, [#allocation9], %s877_s0, %s877_s0, %s878_s14  }
  0x30   :  { %861 = dma.done.wait [#allocation3], 256  }
  0x31   :  { %862 = vsyncadd [#allocation3], 4294967040 }
  0x32   :  { %863 = dma.done.wait [#allocation6], 1088  }
  0x33   :  { %864 = vsyncadd [#allocation6], 4294966208 }
  0x34   :  { %865 = dma.done.wait [#allocation9], 4096  }
  0x35   :  { %866 = vsyncadd [#allocation9], 4294963200  ;;  %v879_v0 = vmov 0   ;;  %v717_v1 = vld [vmem:[#allocation5 + $0x24] ss:$16 sps:$4 sm:$0xff]   ;;  %v76_v10 = vld [vmem:[#allocation2 + $0x8] sm:$0xff]  ;;  %v88_v44 = vlaneseq }
  0x36   :  { %184 = vmatprep.mubr.bf16.mxu0 %v879_v0  ;;  %227 = vmatprep.mubr.bf16.mxu1 %v879_v0  ;;  %v719_v2 = vld [vmem:[#allocation5 + $0x2c] ss:$16 sps:$4 sm:$0xff]   ;;  %v721_v3 = vld [vmem:[#allocation5 + $0x20] ss:$16 sps:$4 sm:$0xff]   ;;  %v722_v4 = vld [vmem:[#allocation5 + $0x28] ss:$16 sps:$4 sm:$0xff]  }
  0x37   :  { %164 = vmatprep.subr.bf16.mxu0 %v717_v1  ;;  %207 = vmatprep.subr.bf16.mxu1 %v719_v2  ;;  %v723_v5 = vld [vmem:[#allocation5 + $0x4] ss:$16 sps:$4 sm:$0xff]   ;;  %v725_v6 = vld [vmem:[#allocation5 + $0xc] ss:$16 sps:$4 sm:$0xff]   ;;  %v727_v7 = vld [vmem:[#allocation5] ss:$16 sps:$4 sm:$0xff]  }
  0x38   :  { %165 = vmatpush1.bf16.msra.mxu0 %v721_v3  ;;  %208 = vmatpush1.bf16.msra.mxu1 %v722_v4  ;;  %v728_v8 = vld [vmem:[#allocation5 + $0x8] ss:$16 sps:$4 sm:$0xff]   ;;  %v75_v9 = vld [vmem:[#allocation2] sm:$0xff]  ;;  %v729_v11 = vld [vmem:[#allocation8 + $0x78] sm:$0xff]   ;;  %vm148_vm0 = vcmask 261120   ;;  %v89_v45 = vshrl.u32 %v88_v44, 7 }
  0x39   :  { %166 = vmatprep.subr.bf16.mxu0 %v723_v5  ;;  %209 = vmatprep.subr.bf16.mxu1 %v725_v6  ;;  %v77_v12 = vpack.c.bf16 %v76_v10, %v75_v9  ;;  %v730_v13 = vld [vmem:[#allocation8 + $0xf8] sm:$0xff]   ;;  %v733_v16 = vld [vmem:[#allocation8 + $0x70] sm:$0xff]   ;;  %v737_v20 = vld [vmem:[#allocation8 + $0x68] sm:$0xff]   ;;  %s880_s17 = smov [#allocation10]  }
  0x3a   :  { %v731_v14 = vld [vmem:[#allocation8 + $0x38] sm:$0xff]   ;;  %v734_v17 = vld [vmem:[#allocation8 + $0xf0] sm:$0xff]   ;;  %v738_v21 = vld [vmem:[#allocation8 + $0xe8] sm:$0xff]   ;;  %v94_v46 = vsub.s32 1, %v89_v45  ;;  %v102_v47 = vsub.s32 3, %v89_v45  ;;  %v90_v48 = vsub.s32 0, %v89_v45 }
  0x3b   :  { %v732_v15 = vld [vmem:[#allocation8 + $0xb8] sm:$0xff]   ;;  %v735_v18 = vld [vmem:[#allocation8 + $0x30] sm:$0xff]   ;;  %v739_v22 = vld [vmem:[#allocation8 + $0x28] sm:$0xff]   ;;  %v98_v49 = vsub.s32 2, %v89_v45  ;;  %s604_s18 = sshll.u32 %s880_s17, 4  ;;  %s605_s18 = int_to_ptr.vmem [resolvable:$true] %s604_s18 }
  0x3c   :  { %167 = vmatpush1.bf16.msra.mxu0 %v727_v7  ;;  %210 = vmatpush1.bf16.msra.mxu1 %v728_v8  ;;  %v736_v19 = vld [vmem:[#allocation8 + $0xb0] sm:$0xff]   ;;  %v740_v23 = vld [vmem:[#allocation8 + $0xa8] sm:$0xff]   ;;  %v741_v24 = vld [vmem:[#allocation8 + $0x60] sm:$0xff]   ;;  %p846_p7 = scmp.lt.s32.totalorder %s605_s18, %s605_s18 }
  0x3d   :  { %661 = vmatprep.subr.bf16.mxu0 %v729_v11  ;;  %683 = vmatprep.subr.bf16.mxu1 %v730_v13  ;;  %v742_v25 = vld [vmem:[#allocation8 + $0xe0] sm:$0xff]   ;;  %v745_v28 = vld [vmem:[#allocation8 + $0x58] sm:$0xff]   ;;  %v749_v32 = vld [vmem:[#allocation8 + $0x50] sm:$0xff]  }
  0x3e   :  { %v743_v26 = vld [vmem:[#allocation8 + $0x20] sm:$0xff]   ;;  %v746_v29 = vld [vmem:[#allocation8 + $0xd8] sm:$0xff]   ;;  %v750_v33 = vld [vmem:[#allocation8 + $0xd0] sm:$0xff]  }
  0x3f   :  { %626 = vmatmul.mubr.msk.bf16.vlgmr.msra.gmra.mxu0 %vm148_vm0, %v77_v12  ;;  %627 = vmatmul.mubr.msk.bf16.vlgmr.msra.gmra.mxu1 %vm148_vm0, %v77_v12  ;;  %v744_v27 = vld [vmem:[#allocation8 + $0xa0] sm:$0xff]   ;;  %v747_v30 = vld [vmem:[#allocation8 + $0x18] sm:$0xff]   ;;  %v751_v34 = vld [vmem:[#allocation8 + $0x10] sm:$0xff]  }
  0x40   :  { %662 = vmatpush3.bf16.msra.mxu0 %v731_v14  ;;  %684 = vmatpush3.bf16.msra.mxu1 %v732_v15  ;;  %v748_v31 = vld [vmem:[#allocation8 + $0x98] sm:$0xff]   ;;  %v752_v35 = vld [vmem:[#allocation8 + $0x90] sm:$0xff]   ;;  %v753_v36 = vld [vmem:[#allocation8 + $0x48] sm:$0xff]  }
  0x41   :  { %663 = vmatprep.subr.bf16.mxu0 %v733_v16  ;;  %685 = vmatprep.subr.bf16.mxu1 %v734_v17  ;;  %v754_v37 = vld [vmem:[#allocation8 + $0xc8] sm:$0xff]   ;;  %v757_v40 = vld [vmem:[#allocation8 + $0x40] sm:$0xff]   ;;  %v86_v50 = vld [vmem:[#allocation7] sm:$0xf] }
  0x42   :  { %v755_v38 = vld [vmem:[#allocation8 + $0x8] sm:$0xff]   ;;  %v758_v41 = vld [vmem:[#allocation8 + $0xc0] sm:$0xff]   ;;  %v95_v53 = vrot.slane %v86_v50, %v94_v46  ;;  %v103_v54 = vrot.slane %v86_v50, %v102_v47  ;;  %v91_v55 = vrot.slane %v86_v50, %v90_v48  ;;  %v99_v56 = vrot.slane %v86_v50, %v98_v49 }
  0x43   :  { %v756_v39 = vld [vmem:[#allocation8 + $0x88] sm:$0xff]   ;;  %v759_v42 = vld [vmem:[#allocation8] sm:$0xff]  }
  0x44   :  { %664 = vmatpush3.bf16.msra.mxu0 %v735_v18  ;;  %686 = vmatpush3.bf16.msra.mxu1 %v736_v19  ;;  %v760_v43 = vld [vmem:[#allocation8 + $0x80] sm:$0xff]  }
  0x45   :  { %665 = vmatprep.subr.bf16.mxu0 %v737_v20  ;;  %687 = vmatprep.subr.bf16.mxu1 %v738_v21  ;;  %v628_v21 = vld [vmem:[%s939_s4] ss:$0 sm:$0xff]  ;;  %s841_s4 = scalar_lea.vmem %s605_s18, 256 }
  0x46   :  { %p842_p6 = scmp.ne.s32.totalorder %s605_s18, %s841_s4  ;;  %p847_p8 = scmp.lt.s32.totalorder %s841_s4, %s841_s4 }
  0x48   :  { %666 = vmatpush3.bf16.msra.mxu0 %v739_v22  ;;  %688 = vmatpush3.bf16.msra.mxu1 %v740_v23  ;;  %p848_p9 = por %p847_p8, %p846_p7 }
  0x49   :  { %667 = vmatprep.subr.bf16.mxu0 %v741_v24  ;;  %689 = vmatprep.subr.bf16.mxu1 %v742_v25 }
  0x4a   :  { %p849_p10 = pnand %p848_p9, %p842_p6 }
  0x4c   :  { %668 = vmatpush3.bf16.msra.mxu0 %v743_v26  ;;  %690 = vmatpush3.bf16.msra.mxu1 %v744_v27 }
  0x4d   :  { %669 = vmatprep.subr.bf16.mxu0 %v745_v28  ;;  %691 = vmatprep.subr.bf16.mxu1 %v746_v29 }
  0x50   :  { %670 = vmatpush3.bf16.msra.mxu0 %v747_v30  ;;  %692 = vmatpush3.bf16.msra.mxu1 %v748_v31 }
  0x51   :  { %671 = vmatprep.subr.bf16.mxu0 %v749_v32  ;;  %693 = vmatprep.subr.bf16.mxu1 %v750_v33 }
  0x54   :  { %672 = vmatpush3.bf16.msra.mxu0 %v751_v34  ;;  %694 = vmatpush3.bf16.msra.mxu1 %v752_v35 }
  0x55   :  { %673 = vmatprep.subr.bf16.mxu0 %v753_v36  ;;  %695 = vmatprep.subr.bf16.mxu1 %v754_v37 }
  0x58   :  { %674 = vmatpush3.bf16.msra.mxu0 %v755_v38  ;;  %696 = vmatpush3.bf16.msra.mxu1 %v756_v39 }
  0x59   :  { %675 = vmatprep.subr.bf16.mxu0 %v757_v40  ;;  %697 = vmatprep.subr.bf16.mxu1 %v758_v41 }
  0x5c   :  { %676 = vmatpush3.bf16.msra.mxu0 %v759_v42  ;;  %698 = vmatpush3.bf16.msra.mxu1 %v760_v43 }
  0xff   :  { %v186_v51 = vpop.f32.mrf.mxu0  ;;  %v229_v52 = vpop.f32.mrf.mxu1 }
 0x100   :  { %v187_v1 = vadd.f32 %v186_v51, %v91_v55  ;;  %v230_v2 = vadd.f32 %v229_v52, %v99_v56 }
 0x101   :  { %v188_v57 = vpop.f32.mrf.mxu0  ;;  %v231_v58 = vpop.f32.mrf.mxu1 }
 0x102   :  { %v189_v61 = vadd.f32 %v188_v57, %v95_v53  ;;  %v232_v62 = vadd.f32 %v231_v58, %v103_v54  ;;  %v238_v13 = vmax.f32 %v187_v1, 0.0  ;;  %v240_v14 = vmax.f32 %v230_v2, 0.0 }
 0x103   :  { %v190_v59 = vpop.f32.mrf.mxu0  ;;  %v233_v60 = vpop.f32.mrf.mxu1 }
 0x104   :  { %v191_v63 = vadd.f32 %v190_v59, %v91_v55  ;;  %v234_v0 = vadd.f32 %v233_v60, %v99_v56  ;;  %v239_v9 = vmax.f32 %v189_v61, 0.0  ;;  %v241_v10 = vmax.f32 %v232_v62, 0.0 }
 0x105   :  { %v192_v3 = vpop.f32.mrf.mxu0  ;;  %v235_v4 = vpop.f32.mrf.mxu1 }
 0x106   :  { %v193_v5 = vadd.f32 %v192_v3, %v95_v53  ;;  %v236_v6 = vadd.f32 %v235_v4, %v103_v54  ;;  %v242_v7 = vmax.f32 %v191_v63, 0.0  ;;  %v244_v8 = vmax.f32 %v234_v0, 0.0 }
 0x108   :  { %v243_v11 = vmax.f32 %v193_v5, 0.0  ;;  %v245_v12 = vmax.f32 %v236_v6, 0.0  ;;  %v246_v17 = vpack.c.bf16 %v242_v7, %v238_v13  ;;  %v248_v18 = vpack.c.bf16 %v244_v8, %v240_v14 }
 0x10a   :  { %v247_v15 = vpack.c.bf16 %v243_v11, %v239_v9  ;;  %v249_v16 = vpack.c.bf16 %v245_v12, %v241_v10 }
 0x10c   :  { %545 = vmatprep.mubr.bf16.mxu0 %v247_v15  ;;  %586 = vmatprep.mubr.bf16.mxu1 %v249_v16 }
 0x10d   :  { %546 = vmatmul.mubr.bf16.vlgmr.msra.gmra.mxu0 %v246_v17  ;;  %587 = vmatmul.mubr.bf16.vlgmr.msra.gmra.mxu1 %v248_v18 }
 0x1cd   :  { %v677_v19 = vpop.f32.mrf.mxu0  ;;  %v699_v20 = vpop.f32.mrf.mxu1 }
 0x1cf   :  { %v678_v22 = vpop.f32.mrf.mxu0  ;;  %v700_v23 = vpop.f32.mrf.mxu1 }
 0x1d0   :  { %v679_v24 = vadd.f32 %v678_v22, %v677_v19  ;;  %v701_v28 = vadd.f32 %v700_v23, %v699_v20 }
 0x1d1   :  { %v680_v25 = vpop.f32.mrf.mxu0  ;;  %v702_v26 = vpop.f32.mrf.mxu1 }
 0x1d2   :  { %v548_v27 = vadd.f32 %v679_v24, %v628_v21 }
 0x1d3   :  { %v681_v29 = vpop.f32.mrf.mxu0  ;;  %v703_v30 = vpop.f32.mrf.mxu1 }
 0x1d4   :  { %v589_v31 = vadd.f32 %v701_v28, %v548_v27  ;;  %v682_v32 = vadd.f32 %v681_v29, %v680_v25  ;;  %v704_v35 = vadd.f32 %v703_v30, %v702_v26 }
 0x1d6   :  { %v595_v33 = vmax.f32 %v589_v31, 0.0  ;;  %v551_v34 = vadd.f32 %v682_v32, %v628_v21 }
 0x1d8   :  { %597 = vst [vmem:[#allocation10] sm:$0xff] %v595_v33  ;;  %v592_v36 = vadd.f32 %v704_v35, %v551_v34 }
 0x1da   :  { %v596_v37 = vmax.f32 %v592_v36, 0.0 }
 0x1dc   :  { %598 = vst [vmem:[#allocation10 + $0x8] sm:$0xff] %v596_v37 }
 0x1dd   :  { %852 = shalt.err (!%p849_p10)
}
 0x1de   :  { %610 = dma.vmem_to_hbm [thread:$0]  %s605_s18, 256, %s940_s5, [#allocation4], %s873_s28, %s873_s28, %s874_s29  }
 0x1df   :  { %867 = dma.done.wait [#allocation4], 256  }
 0x1e0   :  { %868 = vsyncadd [#allocation4], 4294967040 }
 0x1e1   :  { %614 = vsyncpa [#allocation3], 1 }
 0x1e2   :  { %615 = vsyncpa [#allocation6], 1 }
 0x1e3   :  { %616 = vsyncpa [#allocation9], 1 }
 0x1e4   :  { %617 = vsyncpa [#allocation4], 1 }

</bundles_post_ra>
